<compile_context>
chip_gen: v7x
topology: tpu7x:2x2x1
jax: 0.10.0
libtpu: 0.0.40
codegen_flags: <defaults>
</compile_context>

<pallas_src>
import functools

import jax
import jax.numpy as jnp
from jax.experimental import pallas as pl
from jax.experimental.pallas import tpu as pltpu


def _round_up(x, m):
    return (x + m - 1) // m * m


def _device_vmem_budget_bytes():
    """~85% of this device's per-core VMEM; conservative 64 MiB fallback."""
    vmem = 64 * 1024 * 1024
    try:
        cap = getattr(pltpu.get_tpu_info(), "vmem_capacity_bytes", None)
        if cap:
            vmem = int(cap)
    except Exception:
        pass
    return int(vmem * 0.85)


def _vmem_estimate_bytes(tm, hidden, tv, s_pad, nvt,
                         x_sz, w_sz, g_sz, a_sz, o_sz, slab_sz):
    """Rough per-core VMEM footprint (double-buffered I/O + resident scratch)."""
    lp = lambda n: _round_up(max(n, 1), 128)   # lane padding
    sp = lambda n: _round_up(max(n, 1), 8)     # sublane padding
    est = 0
    est += 2 * sp(tm) * lp(hidden) * x_sz        # x row tile
    est += 2 * sp(hidden) * lp(tv) * w_sz        # weight vocab tile
    est += 2 * sp(tm) * lp(1) * g_sz             # p_gen
    est += 2 * sp(tm) * lp(s_pad) * a_sz         # attn_w
    est += 2 * sp(tm) * lp(tv) * o_sz            # p_vocab block (streamed)
    est += 2 * sp(tm) * lp(s_pad) * a_sz         # p_copy block
    est += nvt * sp(tm) * lp(tv) * slab_sz       # exp slab (single, scratch)
    est += nvt * sp(tm) * lp(1) * 4              # per-tile max
    est += 2 * sp(tm) * lp(1) * 4                # running max + denom
    return est


def _copy_generator_kernel(x_ref, w_ref, pgen_ref, attn_ref,
                           pvocab_ref, pcopy_ref,
                           eslab_ref, mtile_ref, m_ref, d_ref,
                           *, v_actual, v_padded, tv, num_v_tiles):
    p = pl.program_id(1)   # 0: matmul + online softmax, 1: normalize + emit
    j = pl.program_id(2)   # vocab tile

    @pl.when(jnp.logical_and(p == 0, j == 0))
    def _init():
        m_ref[...] = jnp.full(m_ref.shape, -jnp.inf, dtype=jnp.float32)
        d_ref[...] = jnp.zeros(d_ref.shape, dtype=jnp.float32)
        # p_copy is independent of the vocab loop: compute once per row tile.
        p_gen = pgen_ref[...].astype(jnp.float32)          # [tm, 1]
        attn = attn_ref[...].astype(jnp.float32)           # [tm, S_pad]
        pcopy_ref[...] = (attn * (1.0 - p_gen)).astype(pcopy_ref.dtype)

    @pl.when(p == 0)
    def _matmul_pass():
        # Linear (no bias) on the MXU: native input dtype, f32 accumulation.
        logits = jnp.dot(x_ref[...], w_ref[...],
                         preferred_element_type=jnp.float32)        # [tm, tv]
        if v_padded != v_actual:
            # Mask padded vocab columns; the scalar bound is only restrictive
            # on the last vocab tile, so the cost is one compare + one select.
            col = jax.lax.broadcasted_iota(jnp.int32, logits.shape, 1)
            bound = jnp.where(j == num_v_tiles - 1,
                              v_actual - (num_v_tiles - 1) * tv, tv)
            logits = jnp.where(col < bound, logits, -jnp.inf)
        # Online softmax: exponentiate against the running max now (EUP work
        # interleaves with the surrounding MXU/DMA activity), rescale the
        # running denominator, and record this tile's reference max.
        m_prev = m_ref[...]                                          # [tm, 1]
        m_new = jnp.maximum(m_prev, jnp.max(logits, axis=-1, keepdims=True))
        e = jnp.exp(logits - m_new)                                  # [tm, tv]
        d_ref[...] = (d_ref[...] * jnp.exp(m_prev - m_new)
                      + jnp.sum(e, axis=-1, keepdims=True))
        m_ref[...] = m_new
        mtile_ref[j] = m_new
        eslab_ref[j] = e.astype(eslab_ref.dtype)

    @pl.when(p == 1)
    def _normalize_pass():
        # corr = exp(m_tile - m_final) * p_gen / denom  (one [tm, 1] column);
        # EUP approx reciprocal co-issues with the VPU work, error << tolerance.
        p_gen = pgen_ref[...].astype(jnp.float32)
        scale = pl.reciprocal(d_ref[...], approx=True) * p_gen
        corr = jnp.exp(mtile_ref[j] - m_ref[...]) * scale
        pvocab_ref[...] = (eslab_ref[j].astype(jnp.float32) * corr
                           ).astype(pvocab_ref.dtype)


def copy_generator_forward(x, w_t, p_gen, attn_w, *, tm=None, tv=2048,
                           out_dtype=None, compute_dtype=None):
    """CopyGenerator forward.

    x: [N, H], w_t: [H, V] (= proj.weight.T), p_gen: [N, 1], attn_w: [N, S].
    compute_dtype: optionally cast x / w_t (e.g. jnp.bfloat16) before the call;
    halves the dominant weight HBM stream (recommended for production).
    """
    if compute_dtype is not None:
        compute_dtype = jnp.dtype(compute_dtype)
        x = x.astype(compute_dtype)
        w_t = w_t.astype(compute_dtype)

    N, H = x.shape
    H2, V = w_t.shape
    assert H2 == H
    _, S = attn_w.shape
    out_dtype = x.dtype if out_dtype is None else jnp.dtype(out_dtype)
    slab_dtype = out_dtype        # bf16 output -> bf16 slab; f32 stays exact

    # ---- vocab / src tiling -------------------------------------------------
    tv_eff = min(tv, _round_up(V, 128))
    v_pad = _round_up(V, tv_eff)
    num_v_tiles = v_pad // tv_eff
    s_pad = _round_up(S, 128)                       # lane-dense p_copy block

    x_sz = jnp.dtype(x.dtype).itemsize
    w_sz = jnp.dtype(w_t.dtype).itemsize
    g_sz = jnp.dtype(p_gen.dtype).itemsize
    a_sz = jnp.dtype(attn_w.dtype).itemsize
    o_sz = jnp.dtype(out_dtype).itemsize
    slab_sz = jnp.dtype(slab_dtype).itemsize

    # ---- row tiling: fit the device VMEM budget, then split for megacore ---
    vmem_budget = _device_vmem_budget_bytes()
    n_pad8 = _round_up(N, 8)
    tm_eff = _round_up(min(512 if tm is None else tm, n_pad8), 8)
    while tm_eff > 8 and _vmem_estimate_bytes(
            tm_eff, H, tv_eff, s_pad, num_v_tiles,
            x_sz, w_sz, g_sz, a_sz, o_sz, slab_sz) > vmem_budget:
        tm_eff = max(8, _round_up(tm_eff // 2, 8))
    if n_pad8 > 8 and (n_pad8 + tm_eff - 1) // tm_eff < 2:
        # Guarantee >=2 row tiles so the "parallel" row axis can be sharded
        # across both v7x TensorCores.
        tm_eff = _round_up((n_pad8 + 1) // 2, 8)
    n_pad = _round_up(N, tm_eff)

    # ---- zero-pad (padded rows carry p_gen = 0; sliced off afterwards) -----
    x_p = jnp.pad(x, ((0, n_pad - N), (0, 0)))
    w_p = jnp.pad(w_t, ((0, 0), (0, v_pad - V)))
    pgen_p = jnp.pad(p_gen, ((0, n_pad - N), (0, 0)))
    attn_p = jnp.pad(attn_w, ((0, n_pad - N), (0, s_pad - S)))

    grid = (n_pad // tm_eff, 2, num_v_tiles)
    last = num_v_tiles - 1

    kernel = functools.partial(
        _copy_generator_kernel,
        v_actual=V, v_padded=v_pad, tv=tv_eff, num_v_tiles=num_v_tiles)

    cost = pl.CostEstimate(
        flops=2 * n_pad * H * v_pad,
        transcendentals=n_pad * (v_pad + 2 * num_v_tiles),
        bytes_accessed=(x_p.size * x_sz
                        + (n_pad // tm_eff) * H * v_pad * w_sz
                        + pgen_p.size * g_sz + attn_p.size * a_sz
                        + n_pad * v_pad * o_sz + n_pad * s_pad * a_sz),
    )

    p_vocab, p_copy = pl.pallas_call(
        kernel,
        out_shape=(
            jax.ShapeDtypeStruct((n_pad, v_pad), out_dtype),
            jax.ShapeDtypeStruct((n_pad, s_pad), attn_w.dtype),
        ),
        grid_spec=pltpu.PrefetchScalarGridSpec(
            num_scalar_prefetch=0,
            grid=grid,
            in_specs=[
                # x row tile: fetched once per row tile.
                pl.BlockSpec((tm_eff, H), lambda i, p, j: (i, 0)),
                # Weight vocab tile: streamed during pass 0, parked on the last
                # tile during pass 1 (no redundant HBM re-fetch).
                pl.BlockSpec((H, tv_eff),
                             lambda i, p, j: (0, j * (1 - p) + last * p)),
                pl.BlockSpec((tm_eff, 1), lambda i, p, j: (i, 0)),       # p_gen
                pl.BlockSpec((tm_eff, s_pad), lambda i, p, j: (i, 0)),   # attn_w
            ],
            out_specs=[
                # p_vocab: streamed lane-dense (tm, tv) blocks, written in pass 1.
                pl.BlockSpec((tm_eff, tv_eff), lambda i, p, j: (i, j * p)),
                # p_copy: resident per row tile, written once.
                pl.BlockSpec((tm_eff, s_pad), lambda i, p, j: (i, 0)),
            ],
            scratch_shapes=[
                pltpu.VMEM((num_v_tiles, tm_eff, tv_eff), slab_dtype),   # exp slab
                pltpu.VMEM((num_v_tiles, tm_eff, 1), jnp.float32),       # per-tile max
                pltpu.VMEM((tm_eff, 1), jnp.float32),                    # running max
                pltpu.VMEM((tm_eff, 1), jnp.float32),                    # running denom
            ],
        ),
        compiler_params=pltpu.CompilerParams(
            dimension_semantics=("parallel", "arbitrary", "arbitrary"),
            vmem_limit_bytes=vmem_budget,
        ),
        cost_estimate=cost,
    )(x_p, w_p, pgen_p, attn_p)

    return p_vocab[:N, :V], p_copy[:N, :S]


def reference_forward(x, w_t, p_gen, attn_w):
    logits = x.astype(jnp.float32) @ w_t.astype(jnp.float32)
    p_vocab = jax.nn.softmax(logits, axis=-1) * p_gen
    p_copy = attn_w * (1.0 - p_gen)
    return p_vocab, p_copy


if __name__ == "__main__":
    # N = batch * len_tgt = 10, hidden = 32, n_words = 250, len_src = 100.
    # Intentionally NOT tile aligned: exercises row / vocab / src padding,
    # last-tile column masking, the multi-vocab-tile online-softmax path and
    # two row tiles (megacore split).
    N, hidden, n_words, len_src = 10, 32, 250, 100

    key = jax.random.PRNGKey(0)
    k_x, k_w, k_g, k_a = jax.random.split(key, 4)

    x = jax.random.normal(k_x, (N, hidden), dtype=jnp.float32)
    proj_weight = 0.1 * jax.random.normal(k_w, (n_words, hidden), dtype=jnp.float32)
    w_t = proj_weight.T  # [hidden, n_words] so kernel computes x @ W^T
    p_gen = jax.nn.sigmoid(jax.random.normal(k_g, (N, 1), dtype=jnp.float32))
    attn_w = jax.nn.softmax(
        jax.random.normal(k_a, (N, len_src), dtype=jnp.float32), axis=-1)

    ref_vocab, ref_copy = reference_forward(x, w_t, p_gen, attn_w)

    # f32 path; tv=128 at toy scale forces multiple vocab tiles through the
    # online-softmax / two-pass normalization (production default is tv=2048).
    p_vocab, p_copy = copy_generator_forward(x, w_t, p_gen, attn_w, tv=128)
    jax.block_until_ready((p_vocab, p_copy))
    assert p_vocab.shape == ref_vocab.shape and p_copy.shape == ref_copy.shape
    assert jnp.allclose(p_vocab, ref_vocab, atol=3e-5, rtol=1e-3)
    assert jnp.allclose(p_copy, ref_copy, atol=1e-6, rtol=1e-5)

    # bf16 streaming path (the production configuration from the perf review):
    # x / W / slab / p_vocab in bf16, looser tolerance.
    pv_bf16, pc_bf16 = copy_generator_forward(
        x, w_t, p_gen, attn_w, tv=128, compute_dtype=jnp.bfloat16)
    jax.block_until_ready((pv_bf16, pc_bf16))
    assert jnp.allclose(pv_bf16.astype(jnp.float32), ref_vocab,
                        atol=5e-3, rtol=5e-2)
    assert jnp.allclose(pc_bf16, ref_copy, atol=1e-6, rtol=1e-5)

    print("KERNEL_OK")
</pallas_src>

<mosaic_0001>
module attributes {stable_mosaic.version = 11 : i64} {
  func.func @_copy_generator_kernel(%arg0: i32, %arg1: i32, %arg2: i32, %arg3: memref<8x32xf32, #tpu.memory_space<vmem>>, %arg4: memref<32x128xf32, #tpu.memory_space<vmem>>, %arg5: memref<8x1xf32, #tpu.memory_space<vmem>>, %arg6: memref<8x128xf32, #tpu.memory_space<vmem>>, %arg7: memref<8x128xf32, #tpu.memory_space<vmem>>, %arg8: memref<8x128xf32, #tpu.memory_space<vmem>>, %arg9: memref<2x8x128xf32, #tpu.memory_space<vmem>>, %arg10: memref<2x8x1xf32, #tpu.memory_space<vmem>>, %arg11: memref<8x1xf32, #tpu.memory_space<vmem>>, %arg12: memref<8x1xf32, #tpu.memory_space<vmem>>) attributes {dimension_semantics = [#tpu.dimension_semantics<parallel>, #tpu.dimension_semantics<arbitrary>, #tpu.dimension_semantics<arbitrary>], iteration_bounds = array<i64: 2, 2, 2>, scalar_prefetch = 0 : i64, scratch_operands = 4 : i64, tpu.core_type = #tpu.core_type<tc>, window_params = [{transform_indices = @transform_0, window_bounds = array<i64: 8, 32>}, {transform_indices = @transform_1, window_bounds = array<i64: 32, 128>}, {transform_indices = @transform_2, window_bounds = array<i64: 8, 1>}, {transform_indices = @transform_3, window_bounds = array<i64: 8, 128>}, {transform_indices = @transform_4, window_bounds = array<i64: 8, 128>}, {transform_indices = @transform_5, window_bounds = array<i64: 8, 128>}]} {
    %c0_i32 = arith.constant 0 : i32
    %0 = arith.cmpi eq, %arg1, %c0_i32 : i32
    %c0_i32_0 = arith.constant 0 : i32
    %1 = arith.cmpi eq, %arg2, %c0_i32_0 : i32
    %2 = arith.andi %0, %1 : i1
    %3 = arith.extui %2 : i1 to i32
    %c0_i32_1 = arith.constant 0 : i32
    %4 = arith.cmpi ne, %3, %c0_i32_1 : i32
    scf.if %4 {
      %cst = arith.constant 0xFF800000 : f32
      %11 = vector.broadcast %cst : f32 to vector<8x1xf32>
      %c0 = arith.constant 0 : index
      %c0_5 = arith.constant 0 : index
      %12 = vector.load %arg11[%c0, %c0_5] : memref<8x1xf32, #tpu.memory_space<vmem>>, vector<8x1xf32>
      tpu.vector_store %arg11[%c0, %c0_5], %11 {strides = array<i32>} : memref<8x1xf32, #tpu.memory_space<vmem>>, vector<8x1xf32>,
      %cst_6 = arith.constant 0.000000e+00 : f32
      %13 = vector.broadcast %cst_6 : f32 to vector<8x1xf32>
      %c0_7 = arith.constant 0 : index
      %c0_8 = arith.constant 0 : index
      %14 = vector.load %arg12[%c0_7, %c0_8] : memref<8x1xf32, #tpu.memory_space<vmem>>, vector<8x1xf32>
      tpu.vector_store %arg12[%c0_7, %c0_8], %13 {strides = array<i32>} : memref<8x1xf32, #tpu.memory_space<vmem>>, vector<8x1xf32>,
      %c0_9 = arith.constant 0 : index
      %c0_10 = arith.constant 0 : index
      %15 = vector.load %arg5[%c0_9, %c0_10] : memref<8x1xf32, #tpu.memory_space<vmem>>, vector<8x1xf32>
      %c0_11 = arith.constant 0 : index
      %c0_12 = arith.constant 0 : index
      %16 = vector.load %arg6[%c0_11, %c0_12] : memref<8x128xf32, #tpu.memory_space<vmem>>, vector<8x128xf32>
      %cst_13 = arith.constant 1.000000e+00 : f32
      %17 = vector.broadcast %cst_13 : f32 to vector<8x1xf32>
      %18 = arith.subf %17, %15 : vector<8x1xf32>
      %19 = vector.broadcast %18 : vector<8x1xf32> to vector<8x128xf32>
      %20 = arith.mulf %16, %19 : vector<8x128xf32>
      %c0_14 = arith.constant 0 : index
      %c0_15 = arith.constant 0 : index
      %21 = vector.load %arg8[%c0_14, %c0_15] : memref<8x128xf32, #tpu.memory_space<vmem>>, vector<8x128xf32>
      tpu.vector_store %arg8[%c0_14, %c0_15], %20 {strides = array<i32>} : memref<8x128xf32, #tpu.memory_space<vmem>>, vector<8x128xf32>,
    } else {
    }
    %c0_i32_2 = arith.constant 0 : i32
    %5 = arith.cmpi eq, %arg1, %c0_i32_2 : i32
    %6 = arith.extui %5 : i1 to i32
    %c0_i32_3 = arith.constant 0 : i32
    %7 = arith.cmpi ne, %6, %c0_i32_3 : i32
    scf.if %7 {
      %c0 = arith.constant 0 : index
      %c0_5 = arith.constant 0 : index
      %11 = vector.load %arg3[%c0, %c0_5] : memref<8x32xf32, #tpu.memory_space<vmem>>, vector<8x32xf32>
      %c0_6 = arith.constant 0 : index
      %c0_7 = arith.constant 0 : index
      %12 = vector.load %arg4[%c0_6, %c0_7] : memref<32x128xf32, #tpu.memory_space<vmem>>, vector<32x128xf32>
      %cst = arith.constant dense<0.000000e+00> : vector<8x128xf32>
      %13 = tpu.matmul %11, %12, %cst {dimension_numbers = #tpu.dot_dimension_numbers<[1], [0], [0], [1], [0, 0, 1, 1], [], []>} : vector<8x32xf32>, vector<32x128xf32>, vector<8x128xf32> -> vector<8x128xf32>
      %14 = tpu.iota {dimensions = array<i32: 1>} : vector<8x128xi32>
      %c1_i32_8 = arith.constant 1 : i32
      %15 = arith.cmpi eq, %arg2, %c1_i32_8 : i32
      %c122_i32 = arith.constant 122 : i32
      %c128_i32 = arith.constant 128 : i32
      %16 = arith.select %15, %c122_i32, %c128_i32 : i32
      %17 = vector.broadcast %16 : i32 to vector<8x128xi32>
      %18 = arith.cmpi slt, %14, %17 : vector<8x128xi32>
      %cst_9 = arith.constant 0xFF800000 : f32
      %19 = vector.broadcast %cst_9 : f32 to vector<8x128xf32>
      %20 = arith.select %18, %13, %19 : vector<8x128xi1>, vector<8x128xf32>
      %c0_10 = arith.constant 0 : index
      %c0_11 = arith.constant 0 : index
      %21 = vector.load %arg11[%c0_10, %c0_11] : memref<8x1xf32, #tpu.memory_space<vmem>>, vector<8x1xf32>
      %cst_12 = arith.constant dense<0xFF800000> : vector<8xf32>
      %22 = vector.multi_reduction <maximumf>, %20, %cst_12 [1] : vector<8x128xf32> to vector<8xf32>
      %23 = vector.shape_cast %22 : vector<8xf32> to vector<8x1xf32>
      %24 = arith.maximumf %21, %23 : vector<8x1xf32>
      %25 = vector.broadcast %24 : vector<8x1xf32> to vector<8x128xf32>
      %26 = arith.subf %20, %25 : vector<8x128xf32>
      %27 = math.exp %26 : vector<8x128xf32>
      %c0_13 = arith.constant 0 : index
      %c0_14 = arith.constant 0 : index
      %28 = vector.load %arg12[%c0_13, %c0_14] : memref<8x1xf32, #tpu.memory_space<vmem>>, vector<8x1xf32>
      %29 = arith.subf %21, %24 : vector<8x1xf32>
      %30 = math.exp %29 : vector<8x1xf32>
      %31 = arith.mulf %28, %30 : vector<8x1xf32>
      %cst_15 = arith.constant dense<0.000000e+00> : vector<8xf32>
      %32 = vector.multi_reduction <add>, %27, %cst_15 [1] : vector<8x128xf32> to vector<8xf32>
      %33 = vector.shape_cast %32 : vector<8xf32> to vector<8x1xf32>
      %34 = arith.addf %31, %33 : vector<8x1xf32>
      %c0_16 = arith.constant 0 : index
      %c0_17 = arith.constant 0 : index
      %35 = vector.load %arg12[%c0_16, %c0_17] : memref<8x1xf32, #tpu.memory_space<vmem>>, vector<8x1xf32>
      tpu.vector_store %arg12[%c0_16, %c0_17], %34 {strides = array<i32>} : memref<8x1xf32, #tpu.memory_space<vmem>>, vector<8x1xf32>,
      %c0_18 = arith.constant 0 : index
      %c0_19 = arith.constant 0 : index
      %36 = vector.load %arg11[%c0_18, %c0_19] : memref<8x1xf32, #tpu.memory_space<vmem>>, vector<8x1xf32>
      tpu.vector_store %arg11[%c0_18, %c0_19], %24 {strides = array<i32>} : memref<8x1xf32, #tpu.memory_space<vmem>>, vector<8x1xf32>,
      %37 = arith.index_cast %arg2 : i32 to index
      %c0_20 = arith.constant 0 : index
      %c0_21 = arith.constant 0 : index
      %38 = vector.load %arg10[%37, %c0_20, %c0_21] : memref<2x8x1xf32, #tpu.memory_space<vmem>>, vector<1x8x1xf32>
      %39 = vector.shape_cast %38 : vector<1x8x1xf32> to vector<8x1xf32>
      %40 = vector.shape_cast %24 : vector<8x1xf32> to vector<1x8x1xf32>
      tpu.vector_store %arg10[%37, %c0_20, %c0_21], %40 {strides = array<i32>} : memref<2x8x1xf32, #tpu.memory_space<vmem>>, vector<1x8x1xf32>,
      %41 = arith.index_cast %arg2 : i32 to index
      %c0_22 = arith.constant 0 : index
      %c0_23 = arith.constant 0 : index
      %42 = vector.load %arg9[%41, %c0_22, %c0_23] : memref<2x8x128xf32, #tpu.memory_space<vmem>>, vector<1x8x128xf32>
      %43 = vector.shape_cast %42 : vector<1x8x128xf32> to vector<8x128xf32>
      %44 = vector.shape_cast %27 : vector<8x128xf32> to vector<1x8x128xf32>
      tpu.vector_store %arg9[%41, %c0_22, %c0_23], %44 {strides = array<i32>} : memref<2x8x128xf32, #tpu.memory_space<vmem>>, vector<1x8x128xf32>,
    } else {
    }
    %c1_i32 = arith.constant 1 : i32
    %8 = arith.cmpi eq, %arg1, %c1_i32 : i32
    %9 = arith.extui %8 : i1 to i32
    %c0_i32_4 = arith.constant 0 : i32
    %10 = arith.cmpi ne, %9, %c0_i32_4 : i32
    scf.if %10 {
      %c0 = arith.constant 0 : index
      %c0_5 = arith.constant 0 : index
      %11 = vector.load %arg5[%c0, %c0_5] : memref<8x1xf32, #tpu.memory_space<vmem>>, vector<8x1xf32>
      %c0_6 = arith.constant 0 : index
      %c0_7 = arith.constant 0 : index
      %12 = vector.load %arg12[%c0_6, %c0_7] : memref<8x1xf32, #tpu.memory_space<vmem>>, vector<8x1xf32>
      %13 = tpu.reciprocal %12 {approx = true} : vector<8x1xf32> -> vector<8x1xf32>
      %14 = arith.mulf %13, %11 : vector<8x1xf32>
      %15 = arith.index_cast %arg2 : i32 to index
      %c0_8 = arith.constant 0 : index
      %c0_9 = arith.constant 0 : index
      %16 = vector.load %arg10[%15, %c0_8, %c0_9] : memref<2x8x1xf32, #tpu.memory_space<vmem>>, vector<1x8x1xf32>
      %17 = vector.shape_cast %16 : vector<1x8x1xf32> to vector<8x1xf32>
      %c0_10 = arith.constant 0 : index
      %c0_11 = arith.constant 0 : index
      %18 = vector.load %arg11[%c0_10, %c0_11] : memref<8x1xf32, #tpu.memory_space<vmem>>, vector<8x1xf32>
      %19 = arith.subf %17, %18 : vector<8x1xf32>
      %20 = math.exp %19 : vector<8x1xf32>
      %21 = arith.mulf %20, %14 : vector<8x1xf32>
      %22 = arith.index_cast %arg2 : i32 to index
      %c0_12 = arith.constant 0 : index
      %c0_13 = arith.constant 0 : index
      %23 = vector.load %arg9[%22, %c0_12, %c0_13] : memref<2x8x128xf32, #tpu.memory_space<vmem>>, vector<1x8x128xf32>
      %24 = vector.shape_cast %23 : vector<1x8x128xf32> to vector<8x128xf32>
      %25 = vector.broadcast %21 : vector<8x1xf32> to vector<8x128xf32>
      %26 = arith.mulf %24, %25 : vector<8x128xf32>
      %c0_14 = arith.constant 0 : index
      %c0_15 = arith.constant 0 : index
      %27 = vector.load %arg7[%c0_14, %c0_15] : memref<8x128xf32, #tpu.memory_space<vmem>>, vector<8x128xf32>
      tpu.vector_store %arg7[%c0_14, %c0_15], %26 {strides = array<i32>} : memref<8x128xf32, #tpu.memory_space<vmem>>, vector<8x128xf32>,
    } else {
    }
    return
  }
  func.func @transform_0(%arg0: i32, %arg1: i32, %arg2: i32) -> (i32, i32) {
    %c0_i32 = arith.constant 0 : i32
    %c0_i32_0 = arith.constant 0 : i32
    return %arg0, %c0_i32 : i32, i32
  }
  func.func @transform_1(%arg0: i32, %arg1: i32, %arg2: i32) -> (i32, i32) {
    %c1_i32 = arith.constant 1 : i32
    %0 = arith.subi %c1_i32, %arg1 : i32
    %1 = arith.muli %arg2, %0 : i32
    %c1_i32_0 = arith.constant 1 : i32
    %2 = arith.muli %c1_i32_0, %arg1 : i32
    %3 = arith.addi %1, %2 : i32
    %c0_i32 = arith.constant 0 : i32
    %c0_i32_1 = arith.constant 0 : i32
    return %c0_i32, %3 : i32, i32
  }
  func.func @transform_2(%arg0: i32, %arg1: i32, %arg2: i32) -> (i32, i32) {
    %c0_i32 = arith.constant 0 : i32
    %c0_i32_0 = arith.constant 0 : i32
    return %arg0, %c0_i32 : i32, i32
  }
  func.func @transform_3(%arg0: i32, %arg1: i32, %arg2: i32) -> (i32, i32) {
    %c0_i32 = arith.constant 0 : i32
    %c0_i32_0 = arith.constant 0 : i32
    return %arg0, %c0_i32 : i32, i32
  }
  func.func @transform_4(%arg0: i32, %arg1: i32, %arg2: i32) -> (i32, i32) {
    %0 = arith.muli %arg2, %arg1 : i32
    %c0_i32 = arith.constant 0 : i32
    return %arg0, %0 : i32, i32
  }
  func.func @transform_5(%arg0: i32, %arg1: i32, %arg2: i32) -> (i32, i32) {
    %c0_i32 = arith.constant 0 : i32
    %c0_i32_0 = arith.constant 0 : i32
    return %arg0, %c0_i32 : i32, i32
  }
}

</mosaic_0001>

<bundles_post_ra>
// kernel: tpu_custom_call.1
= control target key start
LH: loop header
LB: loop body
LE: loop exit
PB: predicated region body
PF: predicated region fallthrough
CT: control target
= control target key end

     0   :  { %s1723_s0 = inlined_call_operand.vmem [shape: f32[16,32], index: 0, kind: input, shape index: {}]   ;;  %s1724_s1 = inlined_call_operand.hbm [shape: f32[32,256], index: 1, kind: input, shape index: {}]   ;;  %s1725_s2 = inlined_call_operand.vmem [shape: f32[16,1], index: 2, kind: input, shape index: {}]   ;;  %s1726_s3 = inlined_call_operand.hbm [shape: f32[16,128], index: 3, kind: input, shape index: {}]   ;;  %s1727_s4 = inlined_call_operand.hbm [shape: f32[16,256], index: 4, kind: output, shape index: {0}]   ;;  %s1728_s5 = inlined_call_operand.hbm [shape: f32[16,128], index: 5, kind: output, shape index: {1}]  }
   0x1   :  { %1752 = sst [smem:[#allocation32_spill]] %s1723_s0 }
   0x2   :  { %1753 = sst [smem:[#allocation33_spill]] %s1724_s1 }
   0x3   :  { %1754 = sst [smem:[#allocation34_spill]] %s1725_s2 }
   0x4   :  { %1755 = sst [smem:[#allocation35_spill]] %s1726_s3 }
   0x5   :  { %1756 = sst [smem:[#allocation36_spill]] %s1727_s4 }
   0x6   :  { %1757 = sst [smem:[#allocation37_spill]] %s1728_s5 }
   0x7   :  { %11 = vsyncpa [#allocation7], 0 }
   0x8   :  { %13 = vsyncpa [#allocation7 + $0x1], 0 }
   0x9   :  { %14 = vsyncpa [#allocation10], 0 }
   0xa   :  { %16 = vsyncpa [#allocation10 + $0x1], 0 }
   0xb   :  { %17 = vsyncpa [#allocation8], 0 }
   0xc   :  { %19 = vsyncpa [#allocation8 + $0x1], 0 }
   0xd   :  { %20 = vsyncpa [#allocation13], 0 }
   0xe   :  { %22 = vsyncpa [#allocation13 + $0x1], 0  ;;  %s1261_s18 = smov 0   ;;  %s1263_s19 = smov 0  }
   0xf   :  { %s1265_s20 = smov 0   ;;  %s1267_s21 = smov 0  }
  0x10   :  { %s1269_s22 = smov 0   ;;  %s1271_s23 = smov 0  }
  0x11   :  { %s1273_s24 = smov 0   ;;  %s1275_s25 = smov 0  }
  0x12   :  { %s1277_s26 = smov 0   ;;  %s1279_s27 = smov 0  }
  0x13   :  { %s1281_s28 = smov 0   ;;  %s1283_s29 = smov 0  }
  0x14   :  { %s1285_s30 = smov 0   ;;  %s1287_s6 = smov 0  }
  0x15   :  { %s1289_s7 = smov 0   ;;  %s1291_s8 = smov 0  }
  0x16 LB: > { %1758 = sst [smem:[#allocation18_spill]] %s1154_s18  ;;  %s40_s9 = sadd.s32 1, %s1202_s30  ;;  %s1214_s8 = sphi %s1291_s8, %s28_s8   ;;  %s1210_s7 = sphi %s1289_s7, %s1821_s7   ;;  %s1206_s6 = sphi %s1287_s6, %s1820_s6   ;;  %s1202_s30 = sphi %s1285_s30, %s1819_s30   ;;  %s1198_s29 = sphi %s1283_s29, %s1829_s29   ;;  %s1194_s28 = sphi %s1281_s28, %s1817_s28   ;;  %s1190_s27 = sphi %s1279_s27, %s1828_s27   ;;  %s1186_s26 = sphi %s1277_s26, %s1815_s26   ;;  %s1182_s25 = sphi %s1275_s25, %s1814_s25   ;;  %s1178_s24 = sphi %s1273_s24, %s1813_s24   ;;  %s1174_s23 = sphi %s1271_s23, %s1827_s23   ;;  %s1170_s22 = sphi %s1269_s22, %s1826_s22   ;;  %s1166_s21 = sphi %s1267_s21, %s1825_s21   ;;  %s1162_s20 = sphi %s1265_s20, %s1824_s20   ;;  %s1158_s19 = sphi %s1263_s19, %s1823_s19   ;;  %s1154_s18 = sphi %s1261_s18, %s1822_s18  }
  0x17   : > { %1759 = sst [smem:[#allocation19_spill]] %s1182_s25  ;;  %s43_s10 = sadd.s32 1, %s1206_s6 }
  0x18   : > { %1760 = sst [smem:[#allocation20_spill]] %s1186_s26  ;;  %p41_p0 = scmp.ge.s32.totalorder %s40_s9, 2 }
  0x19   : > { %1761 = sst [smem:[#allocation21_spill]] %s1190_s27  ;;  %s77_s11 = ssub.s32 1, %s1206_s6 }
  0x1a   : > { %1762 = sst [smem:[#allocation22_spill]] %s1194_s28  ;;  %s78_s12 = smul.u32 %s1202_s30, %s77_s11 }
  0x1b   : > { %1763 = sst [smem:[#allocation23_spill]] %s1198_s29  ;;  %s86_s13 = sadd.s32 1, %s1186_s26 }
  0x1c   : > { %1764 = sst [smem:[#allocation24_spill]] %s1202_s30  ;;  %s1831_s9 = smov (%p41_p0, %s40_s9), 0 }
  0x1d   : > { %1765 = sst [smem:[#allocation25_spill]] %s1206_s6  ;;  %s1833_s10 = smov (!%p41_p0, %s43_s10), %s1206_s6 }
  0x1e   : > { %1766 = sst [smem:[#allocation26_spill]] %s1210_s7  ;;  %s79_s14 = sadd.s32 %s1206_s6, %s78_s12 }
  0x1f   : > { %1767 = sst [smem:[#allocation27_spill]] %s1831_s9  ;;  %p93_p1 = scmp.ne.s32.totalorder %s1186_s26, %s1182_s25 }
  0x20   : > { %p1737_p2 = scmp.ge.s32.totalorder %s1833_s10, 2  ;;  %p1736_p3 = scmp.eq.s32.totalorder %s1214_s8, 0 }
  0x21   : > { %p1735_p4 = scmp.lt.s32.totalorder %s1214_s8, 8  ;;  %s238_s17 = sand.u32 1, %s1186_s26  }
  0x22   : > { %s1360_s15 = scalar_select %p1737_p2, 0, %s1833_s10  }
  0x23   : > { %p1364_p5 = por %p1736_p3, %p93_p1  ;;  %s737_s5 = sshll.u32 %s238_s17, 5 }
  0x24   : > { %1768 = sst [smem:[#allocation28_spill]] %s1360_s15  ;;  %s80_s11 = ssub.s32 1, %s1360_s15 }
  0x25   : > { %s81_s12 = smul.u32 %s80_s11, %s1831_s9  ;;  %s738_s4 = sshll.u32 %s79_s14, 7 }
  0x26   : > { %s1770_s1 = sld [smem:[#allocation33_spill]]  ;;  %s242_s3 = scalar_lea.vmem [#allocation6], %s737_s5 }
  0x27   : > { %s82_s2 = sadd.s32 %s81_s12, %s1360_s15  ;;  %s251_s18 = sshll.u32 %s242_s3, 4  ;;  %s1377_s18 = int_to_ptr.vmem [resolvable:$true] %s251_s18 }
  0x28   : > { %s83_s29 = ssub.s32 %s79_s14, %s82_s2  ;;  %p1383_p7 = pnand %p1735_p4, %p1364_p5 }
  0x29   : > { %p84_p6 = scmp.eq.s32.totalorder %s83_s29, 0  ;;  %p741_p8 = scmp.ge.s32.totalorder %s1214_s8, 1 }
  0x2a   : > { %p958_p10 = pneg %p1383_p7 }
  0x2b   : > { %s1388_s0 = scalar_select %p84_p6, %s1186_s26, %s86_s13  }
  0x2c   : > { %s1375_s28 = scalar_lea.hbm %s1770_s1, %s738_s4  ;;  %s1391_s4 = scalar_lea.sflag [#allocation7], %s238_s17 }
  0x2d   : > { %1772 = sst [smem:[#allocation29_spill]] %s1388_s0  ;;  %s956_s2 = scalar_lea.hbm %s1375_s28, 512 }
  0x2e   : > { %p957_p9 = scmp.ne.s32.totalorder %s1375_s28, %s956_s2  ;;  %s961_s27 = scalar_lea.hbm %s1770_s1, 1024 }
  0x2f   : > { %p962_p13 = scmp.lt.u32.totalorder %s1375_s28, %s1770_s1  ;;  %p963_p0 = scmp.lt.u32.totalorder %s961_s27, %s956_s2 }
  0x30   : > { %p959_p11 = pnand %p958_p10, %p957_p9  ;;  %p965_p5 = scmp.lt.u32.totalorder %s956_s2, %s1375_s28 }
  0x31   : > { %p964_p1 = por %p963_p0, %p962_p13 }
  0x32   : > { %p960_p12 = pneg %p959_p11 }
  0x33   : > { %p966_p6 = por %p965_p5, %p964_p1 }
  0x35   : > { %p967_p4 = pnand %p966_p6, %p960_p12 }
  0x37   : > { %970 = shalt.err (!%p967_p4)
}
  0x38   : > { %s971_s13 = scalar_lea.vmem %s1377_s18, 512  ;;  %s1216_s16 = smov [#allocation6]  }
  0x39   : > { %p972_p9 = scmp.ne.s32.totalorder %s1377_s18, %s971_s13  ;;  %s976_s17 = sshll.u32 %s1216_s16, 4  ;;  %s977_s17 = int_to_ptr.vmem [resolvable:$false] %s976_s17 }
  0x3a   : > { %s978_s12 = scalar_lea.vmem %s977_s17, 1024  ;;  %p979_p2 = scmp.lt.s32.totalorder %s1377_s18, %s977_s17 }
  0x3b   : > { %p974_p11 = pnand %p972_p9, %p958_p10  ;;  %p980_p13 = scmp.lt.s32.totalorder %s978_s12, %s971_s13 }
  0x3d   : > { %p975_p3 = pneg %p974_p11  ;;  %p981_p0 = por %p980_p13, %p979_p2 }
  0x3f   : > { %p982_p1 = pnand %p981_p0, %p975_p3 }
  0x41   : > { %985 = shalt.err (!%p982_p1)
}
  0x42   : > { %s1217_s2 = smov 256   ;;  %s1218_s3 = smov 128  }
  0x43   : > { %s1219_s5 = smov 8   ;;  %p284_p2 = scmp.lt.s32.totalorder %s1214_s8, 9 }
  0x44   : > { %793 = dma.hbm_to_vmem [thread:$0]  (!%p1383_p7), %s1375_s28, 512, %s1377_s18, %s1391_s4, %s1217_s2, %s1218_s3, %s1219_s5  }
  0x45   : > { %p1422_p3 = pnand %p741_p8, %p284_p2  ;;  %s733_s29 = sadd.s32 4294967295, %s1214_s8  }
  0x46   : > { %s734_s14 = sadd.s32 4294967294, %s1214_s8   ;;  %s47_s11 = sadd.s32 1, %s1210_s7 }
  0x47   : > { %p99_p4 = scmp.ne.s32.totalorder %s1182_s25, %s1178_s24  ;;  %p1774_p10 = scmp.ge.s32.totalorder %s1833_s10, 2 }
  0x48   : > { %p100_p7 = scmp.eq.s32.totalorder %s733_s29, 0  ;;  %s138_s18 = sadd.s32 1, %s1174_s23 }
  0x49   : > { %s1835_s11 = smov (!%p1774_p10, %s47_s11), %s1210_s7  ;;  %p145_p12 = scmp.ne.s32.totalorder %s1174_s23, %s1170_s22 }
  0x4a   : > { %p49_p8 = scmp.ge.s32.totalorder %s1835_s11, 2  ;;  %s1775_s28 = sld [smem:[#allocation18_spill]] }
  0x4b   : > { %p1437_p5 = por %p100_p7, %p99_p4  ;;  %p151_p6 = scmp.ne.s32.totalorder %s1170_s22, %s1166_s21 }
  0x4c   : > { %s1837_s11 = smov (%p49_p8, %s1835_s11), 0  ;;  %p1778_p9 = scmp.eq.s32.totalorder %s1214_s8, 0 }
  0x4d   : > { %s1776_s4 = scalar_select %p1437_p5, 1, 0 }
  0x4e   : > { %1777 = sst [smem:[#allocation30_spill]] %s1837_s11  ;;  %p1450_p11 = por %p145_p12, %p1778_p9 }
  0x4f   : > { %p1457_p13 = por %p151_p6, %p100_p7  ;;  %s135_s13 = ssub.s32 %s1210_s7, %s1837_s11 }
  0x50   : > { %s161_s16 = smul.u32 %s1202_s30, %s1206_s6  ;;  %p136_p0 = scmp.eq.s32.totalorder %s135_s13, 0 }
  0x51   : > { %s1780_s10 = scalar_select %p1457_p13, 1, 0 }
  0x52   : > { %s162_s17 = smul.u32 %s1360_s15, %s1831_s9  ;;  %s168_s12 = sadd.s32 1, %s1162_s20 }
  0x53   : > { %p178_p1 = scmp.ne.s32.totalorder %s1162_s20, %s1158_s19  ;;  %p179_p2 = scmp.eq.s32.totalorder %s733_s29, 7 }
  0x54   : > { %s1471_s2 = scalar_select %p136_p0, %s1174_s23, %s138_s18  }
  0x55   : > { %s164_s3 = ssub.s32 %s161_s16, %s162_s17  ;;  %p184_p4 = scmp.ne.s32.totalorder %s1158_s19, %s1775_s28 }
  0x56   : > { %1781 = sst [smem:[#allocation31_spill]] %s1471_s2  ;;  %s165_s5 = sor.u32 %s164_s3, %s135_s13 }
  0x57   : > { %p166_p10 = scmp.eq.s32.totalorder %s165_s5, 0  ;;  %p1475_p7 = por %p179_p2, %p178_p1 }
  0x58   : > { %p185_p8 = scmp.eq.s32.totalorder %s734_s14, 7  ;;  %p1482_p9 = por %p179_p2, %p145_p12 }
  0x59   : > { %s1782_s1 = scalar_select %p1475_p7, 1, 0 }
  0x5a   : > { %s1783_s11 = scalar_select %p1482_p9, 1, 0 }
  0x5b   : > { %s1487_s15 = scalar_select %p166_p10, %s1162_s20, %s168_s12  }
  0x5c   : > { %p1489_p0 = por %p185_p8, %p184_p4  ;;  %p1496_p13 = por %p185_p8, %p151_p6 }
  0x5d   : > { %s268_s28 = sand.u32 1, %s1174_s23   ;;  %s740_s13 = sshll.u32 %s1210_s7, 7 }
  0x5e   : > { %s1784_s18 = scalar_select %p1489_p0, 1, 0 }
  0x5f   : > { %s1785_s29 = scalar_select %p1496_p13, 1, 0 }
  0x60   : > { %s739_s16 = sshll.u32 %s268_s28, 3  ;;  %s1786_s3 = sld [smem:[#allocation35_spill]] }
  0x61   : > { %s272_s12 = scalar_lea.vmem [#allocation9], %s739_s16  ;;  %p1787_p12 = scmp.lt.s32.totalorder %s1214_s8, 8 }
  0x62   : > { %s279_s9 = sshll.u32 %s272_s12, 4  ;;  %s269_s7 = scalar_lea.sflag [#allocation10], %s268_s28  ;;  %s1515_s9 = int_to_ptr.vmem [resolvable:$true] %s279_s9 }
  0x63   : > { %p1511_p6 = pnand %p1787_p12, %p1450_p11 }
  0x65   : > { %p988_p2 = pneg %p1511_p6 }
  0x66   : > { %s1505_s5 = scalar_lea.hbm %s1786_s3, %s740_s13  ;;  %s991_s16 = scalar_lea.hbm %s1786_s3, 256 }
  0x67   : > { %s986_s14 = scalar_lea.hbm %s1505_s5, 128  ;;  %p992_p11 = scmp.lt.u32.totalorder %s1505_s5, %s1786_s3 }
  0x68   : > { %p987_p1 = scmp.ne.s32.totalorder %s1505_s5, %s986_s14  ;;  %p993_p8 = scmp.lt.u32.totalorder %s991_s16, %s986_s14 }
  0x69   : > { %p995_p13 = scmp.lt.u32.totalorder %s986_s14, %s1505_s5 }
  0x6a   : > { %p989_p4 = pnand %p988_p2, %p987_p1  ;;  %p994_p12 = por %p993_p8, %p992_p11 }
  0x6c   : > { %p990_p10 = pneg %p989_p4  ;;  %p996_p0 = por %p995_p13, %p994_p12 }
  0x6e   : > { %p997_p9 = pnand %p996_p0, %p990_p10 }
  0x70   : > { %1000 = shalt.err (!%p997_p9)
}
  0x71   : > { %s1001_s28 = scalar_lea.vmem %s1515_s9, 128  ;;  %s1220_s13 = smov [#allocation9]  }
  0x72   : > { %p1002_p1 = scmp.ne.s32.totalorder %s1515_s9, %s1001_s28  ;;  %s1006_s24 = sshll.u32 %s1220_s13, 4  ;;  %s1007_s24 = int_to_ptr.vmem [resolvable:$false] %s1006_s24 }
  0x73   : > { %s1008_s17 = scalar_lea.vmem %s1007_s24, 256  ;;  %p1009_p5 = scmp.lt.s32.totalorder %s1515_s9, %s1007_s24 }
  0x74   : > { %p1004_p4 = pnand %p1002_p1, %p988_p2  ;;  %p1010_p11 = scmp.lt.s32.totalorder %s1008_s17, %s1001_s28 }
  0x76   : > { %p1005_p7 = pneg %p1004_p4  ;;  %p1011_p8 = por %p1010_p11, %p1009_p5 }
  0x78   : > { %p1012_p13 = pnand %p1011_p8, %p1005_p7 }
  0x7a   : > { %1015 = shalt.err (!%p1012_p13)
}
  0x7b   : > { %796 = dma.hbm_to_vmem [thread:$0]  (!%p1511_p6), %s1505_s5, 128, %s1515_s9, %s269_s7  }
  0x7c   : > { %288 = sbr.rel (%p1422_p3) target bundleno = 1163 (0x48b), region = 36  ;;  %s290_s14 = sand.u32 (!%p1422_p3), 1, %s1182_s25  }
  0x7d   : > { %s742_s16 = sshll.u32 (!%p1422_p3), %s290_s14, 5  ;;  %s291_s12 = scalar_lea.sflag (!%p1422_p3), [#allocation7], %s290_s14 }
  0x7e   : > { %s1545_s13 = scalar_lea.vmem (!%p1422_p3), [#allocation6], %s742_s16  ;;  %p1789_p9 = scmp.ne.s32.totalorder (!%p1422_p3), %s1776_s4, 0 }
  0x83   : > { %1137 = dma.done.wait (%p1789_p9), %s291_s12, 512  }
  0x84   : > { %1139 = vsyncadd (%p1789_p9), %s291_s12, 4294966784  ;;  %s1552_s6 = sand.u32 1, %s1170_s22   ;;  %p1790_p3 = scmp.ne.s32.totalorder %s1780_s10, 0 }
  0x85   : > { %s743_s7 = sshll.u32 %s1552_s6, 3  ;;  %s300_s9 = scalar_lea.sflag [#allocation10], %s1552_s6 }
  0x86   : > { %s303_s27 = scalar_lea.vmem [#allocation9], %s743_s7 }
  0x87   : > { %1141 = dma.done.wait (%p1790_p3), %s300_s9, 128  }
  0x88   : > { %1143 = vsyncadd (%p1790_p3), %s300_s9, 4294967168  ;;  %s1791_s5 = sld [smem:[#allocation23_spill]]  ;;  %s1792_s28 = sld [smem:[#allocation22_spill]] }
  0x89   : > { %s1793_s4 = sld [smem:[#allocation21_spill]]  ;;  %s1751_s24 = sand.u32 1, %s1158_s19  }
  0x8a   : > { %s1563_s17 = sshll.u32 %s1751_s24, 3  ;;  %s1794_s10 = sld [smem:[#allocation32_spill]] }
  0x8b   : > { %s1795_s0 = sld [smem:[#allocation34_spill]]  ;;  %s340_s25 = scalar_lea.vmem [#allocation11], %s1563_s17 }
  0x8c   : > { %s1580_s24 = scalar_lea.vmem [#allocation12], %s743_s7 }
  0x8e   : > { %p348_p5 = scmp.lt.s32.totalorder %s1791_s5, 1  ;;  %p360_p7 = scmp.eq.s32.totalorder %s1792_s28, 0 }
  0x8f   : > { %p361_p0 = scmp.eq.s32.totalorder %s1793_s4, 0 }
  0x90   : > { %s1839_s5 = smov (!%p348_p5, %s1791_s5), 1 }
  0x91   : > { %s746_s14 = sshll.u32 %s1839_s5, 3  ;;  %p362_p6 = pnand %p361_p0, %p360_p7 }
  0x92   : > { %s1572_s9 = scalar_lea.vmem %s1794_s10, %s746_s14  ;;  %s1577_s26 = scalar_lea.vmem %s1795_s0, %s746_s14  ;;  %v1221_v1 = vmov (!%p362_p6), 0   ;;  %vm366_vm0 = vcmask (!%p362_p6), 7168   ;;  %v1222_v3 = vmov (!%p362_p6), -inf   ;;  %v1223_v4 = vmov (!%p362_p6), 0.0   ;;  %v370_v5 = vld [vmem:[%s303_s27] sm:$0xff] (!%p362_p6) }
  0x93   : > { %365 = sbr.rel (%p362_p6) target bundleno = 281 (0x119), region = 48  ;;  %v369_v0 = vld [vmem:[%s1577_s26] sm:$0xff] (!%p362_p6)  ;;  %945 = vset.pattern.permute.xlu0 (!%p362_p6), %v1221_v1  ;;  %367 = vst.msk [vmem:[#allocation4] sm:$0xff] (!%p362_p6), %vm366_vm0, %v1222_v3  ;;  %368 = vst.msk [vmem:[#allocation5] sm:$0xff] (!%p362_p6), %vm366_vm0, %v1223_v4 }
  0x94   : > { %v371_v2 = vsub.f32 (!%p362_p6), 1.0, %v369_v0 }
  0x96   : > { %374 = vperm.xlu0 (!%p362_p6), %945, %v371_v2  }
 0x115   : > { %v375_v6 = vpop.permute.xlu0 %374 }
 0x116   : > { %v377_v7 = vmul.f32 %v375_v6, %v370_v5 }
 0x118   : > { %378 = vst [vmem:[%s1580_s24] sm:$0xff] %v377_v7 }
 0x119 PF: > { %s1796_s30 = sld [smem:[#allocation22_spill]] }
 0x11f   : > { %p748_p2 = scmp.ne.s32.totalorder %s1796_s30, 0 }
 0x120   : > { %v383_v8 = vld [vmem:[%s1545_s13] sm:$0xff] (!%p748_p2)  ;;  %v384_v9 = vld [vmem:[%s1545_s13 + $0x8] sm:$0xff] (!%p748_p2)  ;;  %s1797_s0 = sld [smem:[#allocation21_spill]] (!%p748_p2)  ;;  %v385_v10 = vld [vmem:[%s1545_s13 + $0x10] sm:$0xff] (!%p748_p2)  ;;  %v1224_v11 = vmov (!%p748_p2), 0.0|0.0   ;;  %vm1225_vm1 = vmmov (!%p748_p2), 0   ;;  %v461_v17 = vlaneseq (!%p748_p2) }
 0x121   : > { %381 = sbr.rel (%p748_p2) target bundleno = 943 (0x3af), region = 52  ;;  %776 = vmatprep.subr.bf16.mxu0 (!%p748_p2), %v1224_v11  ;;  %v777_v12 = vpack.c.bf16 (!%p748_p2), %v384_v9, %v383_v8  ;;  %v386_v13 = vld [vmem:[%s1545_s13 + $0x18] sm:$0xff] (!%p748_p2)  ;;  %v1226_v14 = vmov (!%p748_p2), 0.0   ;;  %v382_v16 = vld [vmem:[%s1572_s9] sm:$0xff] (!%p748_p2)  ;;  %vm387_vm2 = vcmask (!%p748_p2), 261120   ;;  %v1227_v23 = vmov (!%p748_p2), 0  }
 0x122   : > { %773 = vmatprep.mubr.msk.f32.mxu0 (!%p748_p2), %vm1225_vm1, %v1226_v14  ;;  %v780_v15 = vpack.c.bf16 (!%p748_p2), %v386_v13, %v385_v10  ;;  %v462_v18 = vand.u32 (!%p748_p2), 127, %v461_v17  ;;  %946 = vset.pattern.permute.xlu0 (!%p748_p2), %v1227_v23  ;;  %v468_v24 = vld [vmem:[#allocation4] sm:$0xff] (!%p748_p2)  ;;  %vm488_vm4 = vcmask (!%p748_p2), 7168   ;;  %v480_v34 = vld [vmem:[#allocation5] sm:$0xff] (!%p748_p2) }
 0x123   : > { %778 = vmatpush3.bf16.msra.mxu0 (!%p748_p2), %v777_v12 }
 0x124   : > { %779 = vmatprep.subr.bf16.mxu0 (!%p748_p2), %v1224_v11 }
 0x126   : > { %p463_p10 = scmp.eq.s32.totalorder (!%p748_p2), %s1797_s0, 1  ;;  %s750_s13 = sshll.u32 (!%p748_p2), %s1797_s0, 3 }
 0x127   : > { %781 = vmatpush3.bf16.msra.mxu0 (!%p748_p2), %v780_v15  ;;  %s492_s7 = scalar_lea.vmem (!%p748_p2), [#allocation3], %s750_s13  ;;  %s494_s27 = scalar_lea.vmem (!%p748_p2), [#allocation2], %s750_s13 }
 0x128   : > { %s464_s3 = scalar_select %p463_p10, 122, 128 }
 0x12a   : > { %774 = vmatmul.mubr.msk.f32.vlgmr.msra.gmra.mrb[0].mxu0 %vm387_vm2, %v382_v16  ;;  %v465_v19 = vstv %s464_s3 }
 0x12b   : > { %vm466_vm3 = vcmp.lt.s32.totalorder %v462_v18, %v465_v19 }
 0x1fd   : > { %v457_v20 = vpop.f32.mrb[0].mxu0 }
 0x1fe   : > { %v775_v21 = vpop.f32.mrb[1].mxu0  ;;  %v467_v22 = vsel %vm466_vm3, %v457_v20, -inf }
 0x1ff   : > { %469 = vmax.xlane.f32.xlu0 %v467_v22 }
 0x28c   : > { %v470_v25 = vpop.xlane.xlu0 %469 }
 0x28d   : > { %v471_v26 = vmax.f32 %v468_v24, %v470_v25 }
 0x28f   : > { %v481_v27 = vsub.f32 %v468_v24, %v471_v26  ;;  %490 = vst.msk [vmem:[#allocation4] sm:$0xff] %vm488_vm4, %v471_v26  ;;  %493 = vst.msk [vmem:[%s492_s7] sm:$0xff] %vm488_vm4, %v471_v26  ;;  %474 = vperm.xlu0 %946, %v471_v26  }
 0x291   : > { %v482_v32 = vmul.f32 1.442695, %v481_v27 }
 0x30e   : > { %v475_v28 = vpop.permute.xlu0 %474 }
 0x30f   : > { %v477_v29 = vsub.f32 %v467_v22, %v475_v28 }
 0x311   : > { %v478_v30 = vmul.f32 1.442695, %v477_v29 }
 0x313   : > { %947 = vpow2.f32 %v478_v30 }
 0x314   : > { %949 = vpow2.f32 %v482_v32 }
 0x31d   : > { %v948_v31 = vpop.eup %947 }
 0x31e   : > { %495 = vst [vmem:[%s494_s27] sm:$0xff] %v948_v31  ;;  %485 = vadd.xlane.f32.xlu1 %v948_v31  ;;  %v950_v33 = vpop.eup %949 }
 0x31f   : > { %v484_v35 = vmul.f32 %v950_v33, %v480_v34 }
 0x3ab   : > { %v486_v36 = vpop.xlane.xlu1 %485 }
 0x3ac   : > { %v487_v37 = vadd.f32 %v486_v36, %v484_v35 }
 0x3ae   : > { %489 = vst.msk [vmem:[#allocation5] sm:$0xff] %vm488_vm4, %v487_v37 }
 0x3af PF: > { %s1798_s5 = sld [smem:[#allocation22_spill]] }
 0x3b5   : > { %p751_p12 = scmp.ne.s32.totalorder %s1798_s5, 1 }
 0x3b6   : > { %v501_v38 = vld [vmem:[#allocation5] sm:$0xff] (!%p751_p12)  ;;  %s1799_s28 = sld [smem:[#allocation21_spill]] (!%p751_p12)  ;;  %v507_v39 = vld [vmem:[#allocation4] sm:$0xff] (!%p751_p12)  ;;  %v1228_v40 = vmov (!%p751_p12), 0  }
 0x3b7   : > { %499 = sbr.rel (%p751_p12) target bundleno = 1107 (0x453), region = 56  ;;  %951 = vset.pattern.permute.xlu0 (!%p751_p12), %v1228_v40  ;;  %952 = vrcp.f32 (!%p751_p12), %v501_v38  ;;  %v500_v45 = vld [vmem:[%s1577_s26] sm:$0xff] (!%p751_p12) }
 0x3bc   : > { %s752_s4 = sshll.u32 (!%p751_p12), %s1799_s28, 3 }
 0x3bd   : > { %s505_s14 = scalar_lea.vmem (!%p751_p12), [#allocation3], %s752_s4  ;;  %s512_s16 = scalar_lea.vmem (!%p751_p12), [#allocation2], %s752_s4 }
 0x3be   : > { %v506_v41 = vld [vmem:[%s505_s14] sm:$0xff] }
 0x3bf   : > { %v508_v42 = vsub.f32 %v506_v41, %v507_v39  ;;  %v513_v49 = vld [vmem:[%s512_s16] sm:$0xff] }
 0x3c1   : > { %v509_v43 = vmul.f32 1.442695, %v508_v42  ;;  %v953_v44 = vpop.eup %952 }
 0x3c2   : > { %v503_v46 = vmul.f32 %v953_v44, %v500_v45 }
 0x3c3   : > { %954 = vpow2.f32 %v509_v43 }
 0x3cd   : > { %v955_v47 = vpop.eup %954 }
 0x3ce   : > { %v511_v48 = vmul.f32 %v955_v47, %v503_v46 }
 0x3d0   : > { %516 = vperm.xlu0 %951, %v511_v48  }
 0x44f   : > { %v517_v50 = vpop.permute.xlu0 %516 }
 0x450   : > { %v519_v51 = vmul.f32 %v517_v50, %v513_v49 }
 0x452   : > { %520 = vst [vmem:[%s340_s25] sm:$0xff] %v519_v51 }
 0x453 PF: > { %s1800_s12 = sld [smem:[#allocation22_spill]]  ;;  %s1801_s10 = sld [smem:[#allocation21_spill]] }
 0x454   : > { %s1802_s9 = sld [smem:[#allocation23_spill]]  ;;  %s543_s0 = sshll.u32 %s340_s25, 4  ;;  %s1605_s0 = int_to_ptr.vmem [resolvable:$true] %s543_s0 }
 0x455   : > { %s1803_s5 = sld [smem:[#allocation36_spill]]  ;;  %s1804_s14 = sand.u32 1, %s1158_s19  }
 0x456   : > { %s522_s16 = scalar_lea.sflag [#allocation8], %s1804_s14  ;;  %s1016_s2 = scalar_lea.vmem %s1605_s0, 128 }
 0x457   : > { %p1017_p1 = scmp.ne.s32.totalorder %s1605_s0, %s1016_s2  ;;  %p1805_p4 = scmp.ne.s32.totalorder %s1782_s1, 0 }
 0x458   : > { %s1229_s25 = smov [#allocation11]  }
 0x459   : > { %s534_s30 = smul.u32 %s1801_s10, %s1800_s12  ;;  %p1018_p11 = pnand %p1017_p1, %p1805_p4 }
 0x45a   : > { %s755_s26 = sshll.u32 %s1802_s9, 1  ;;  %s757_s4 = sshll.u32 %s1802_s9, 7 }
 0x45b   : > { %s539_s3 = sadd.s32 %s755_s26, %s534_s30  ;;  %p1019_p8 = pneg %p1018_p11 }
 0x45c   : > { %s756_s13 = sshll.u32 %s539_s3, 7  ;;  %s1020_s17 = sshll.u32 %s1229_s25, 4  ;;  %s1021_s17 = int_to_ptr.vmem [resolvable:$false] %s1020_s17 }
 0x45d   : > { %s1610_s28 = scalar_lea.hbm %s1803_s5, %s756_s13  ;;  %s1022_s12 = scalar_lea.vmem %s1021_s17, 256 }
 0x45e   : > { %p1023_p13 = scmp.lt.s32.totalorder %s1605_s0, %s1021_s17  ;;  %p1024_p9 = scmp.lt.s32.totalorder %s1022_s12, %s1016_s2 }
 0x460   : > { %p1025_p3 = por %p1024_p9, %p1023_p13 }
 0x462   : > { %p1026_p5 = pnand %p1025_p3, %p1019_p8 }
 0x464   : > { %1029 = shalt.err (!%p1026_p5)
}
 0x465   : > { %s1030_s10 = scalar_lea.hbm %s1610_s28, 128  ;;  %s1034_s3 = scalar_lea.hbm %s1803_s5, 512 }
 0x466   : > { %p1031_p7 = scmp.ne.s32.totalorder %s1610_s28, %s1030_s10  ;;  %p1035_p2 = scmp.lt.u32.totalorder %s1610_s28, %s1803_s5 }
 0x467   : > { %p1036_p10 = scmp.lt.u32.totalorder %s1034_s3, %s1030_s10  ;;  %p1038_p1 = scmp.lt.u32.totalorder %s1030_s10, %s1610_s28 }
 0x468   : > { %p1032_p0 = pnand %p1031_p7, %p1805_p4 }
 0x469   : > { %p1037_p12 = por %p1036_p10, %p1035_p2 }
 0x46a   : > { %p1033_p6 = pneg %p1032_p0 }
 0x46b   : > { %p1039_p11 = por %p1038_p1, %p1037_p12 }
 0x46d   : > { %p1040_p8 = pnand %p1039_p11, %p1033_p6 }
 0x46f   : > { %1043 = shalt.err (!%p1040_p8)
}
 0x470   : > { %786 = dma.vmem_to_hbm [thread:$0]  (%p1805_p4), %s1605_s0, 128, %s1610_s28, %s522_s16  }
 0x471   : > { %s1806_s14 = sld [smem:[#allocation37_spill]]  ;;  %s556_s17 = sshll.u32 %s1580_s24, 4  ;;  %s557_s17 = int_to_ptr.vmem [resolvable:$true] %s556_s17 }
 0x472   : > { %s527_s12 = scalar_lea.sflag [#allocation13], %s1552_s6  ;;  %s1044_s10 = scalar_lea.vmem %s557_s17, 128 }
 0x473   : > { %p1045_p13 = scmp.ne.s32.totalorder %s557_s17, %s1044_s10  ;;  %p1807_p9 = scmp.ne.s32.totalorder %s1783_s11, 0 }
 0x474   : > { %s1230_s1 = smov [#allocation12]  }
 0x475   : > { %p1046_p3 = pnand %p1045_p13, %p1807_p9  ;;  %s1048_s30 = sshll.u32 %s1230_s1, 4  ;;  %s1049_s30 = int_to_ptr.vmem [resolvable:$false] %s1048_s30 }
 0x476   : > { %s1050_s26 = scalar_lea.vmem %s1049_s30, 256  ;;  %p1051_p7 = scmp.lt.s32.totalorder %s557_s17, %s1049_s30 }
 0x477   : > { %s1641_s25 = scalar_lea.hbm %s1806_s14, %s757_s4  ;;  %p1047_p5 = pneg %p1046_p3 }
 0x478   : > { %p1052_p4 = scmp.lt.s32.totalorder %s1050_s26, %s1044_s10 }
 0x47a   : > { %p1053_p0 = por %p1052_p4, %p1051_p7 }
 0x47c   : > { %p1054_p6 = pnand %p1053_p0, %p1047_p5 }
 0x47e   : > { %1057 = shalt.err (!%p1054_p6)
}
 0x47f   : > { %s1058_s6 = scalar_lea.hbm %s1641_s25, 128  ;;  %s1062_s0 = scalar_lea.hbm %s1806_s14, 256 }
 0x480   : > { %p1059_p2 = scmp.ne.s32.totalorder %s1641_s25, %s1058_s6  ;;  %p1063_p1 = scmp.lt.u32.totalorder %s1641_s25, %s1806_s14 }
 0x481   : > { %p1064_p11 = scmp.lt.u32.totalorder %s1062_s0, %s1058_s6  ;;  %p1066_p13 = scmp.lt.u32.totalorder %s1058_s6, %s1641_s25 }
 0x482   : > { %p1060_p10 = pnand %p1059_p2, %p1807_p9 }
 0x483   : > { %p1065_p8 = por %p1064_p11, %p1063_p1 }
 0x484   : > { %p1061_p12 = pneg %p1060_p10 }
 0x485   : > { %p1067_p3 = por %p1066_p13, %p1065_p8 }
 0x487   : > { %p1068_p5 = pnand %p1067_p3, %p1061_p12 }
 0x489   : > { %1071 = shalt.err (!%p1068_p5)
}
 0x48a   : > { %787 = dma.vmem_to_hbm [thread:$0]  (%p1807_p9), %s557_s17, 128, %s1641_s25, %s527_s12  }
 0x48b PF: > { %s1808_s16 = sld [smem:[#allocation18_spill]]  ;;  %p805_p7 = scmp.ge.s32.totalorder %s1214_s8, 2 }
 0x48c   : > { %p1809_p4 = scmp.ne.s32.totalorder %s1784_s18, 0 }
 0x48e   : > { %p798_p0 = pnand %p805_p7, %p1809_p4 }
 0x491   : > { %s568_s3 = sand.u32 1, %s1808_s16  }
 0x492   : > { %s569_s13 = scalar_lea.sflag [#allocation8], %s568_s3 }
 0x493   : > { %1145 = dma.done.wait (!%p798_p0), %s569_s13, 128  }
 0x494   : > { %1147 = vsyncadd (!%p798_p0), %s569_s13, 4294967168  ;;  %s577_s7 = sand.u32 1, %s1166_s21   ;;  %p1810_p6 = scmp.ne.s32.totalorder %s1785_s29, 0 }
 0x495   : > { %s578_s2 = scalar_lea.sflag [#allocation13], %s577_s7 }
 0x496   : > { %p801_p2 = pnand %p805_p7, %p1810_p6 }
 0x498   : > { %1149 = dma.done.wait (!%p801_p2), %s578_s2, 128  }
 0x499   : > { %1151 = vsyncadd (!%p801_p2), %s578_s2, 4294967168  ;;  %s28_s8 = sadd.s32 1, %s1214_s8   ;;  %s1812_s27 = sld [smem:[#allocation31_spill]] }
 0x49a   : > { %p1670_p9 = scmp.ge.s32.totalorder %s28_s8, 10   ;;  %s1813_s24 = sld [smem:[#allocation19_spill]] }
 0x49b   : > { %s1814_s25 = sld [smem:[#allocation20_spill]]  ;;  %s1815_s26 = sld [smem:[#allocation29_spill]] }
 0x49c   : > { %s1816_s29 = sld [smem:[#allocation24_spill]]  ;;  %s1817_s28 = sld [smem:[#allocation25_spill]] }
 0x49d   : > { %s1818_s17 = sld [smem:[#allocation26_spill]]  ;;  %s1819_s30 = sld [smem:[#allocation27_spill]] }
 0x49e   : > { %s1820_s6 = sld [smem:[#allocation28_spill]]  ;;  %s1821_s7 = sld [smem:[#allocation30_spill]] }
 0x49f   : > { %s1822_s18 = smov %s1158_s19  ;;  %s1823_s19 = smov %s1162_s20 }
 0x4a0   : > { %s1824_s20 = smov %s1487_s15  ;;  %s1825_s21 = smov %s1170_s22 }
 0x4a1   : > { %s1826_s22 = smov %s1174_s23  ;;  %s1827_s23 = smov %s1812_s27 }
 0x4a2   : > { %s1828_s27 = smov %s1816_s29  ;;  %27 = sbr.rel (!%p1670_p9) target bundleno = 22 (0x16), region = 133 }
 0x4a3   : > { %s1829_s29 = smov %s1818_s17 }
 0x4a9   :  { %583 = vsyncpa [#allocation7], 1 }
 0x4aa   :  { %585 = vsyncpa [#allocation7 + $0x1], 1 }
 0x4ab   :  { %586 = vsyncpa [#allocation10], 1 }
 0x4ac   :  { %588 = vsyncpa [#allocation10 + $0x1], 1 }
 0x4ad   :  { %589 = vsyncpa [#allocation8], 1 }
 0x4ae   :  { %591 = vsyncpa [#allocation8 + $0x1], 1 }
 0x4af   :  { %592 = vsyncpa [#allocation13], 1 }
 0x4b0   :  { %594 = vsyncpa [#allocation13 + $0x1], 1 }

</bundles_post_ra>
